<compile_context>
chip_gen: v5e
topology: v5e:2x2
jax: 0.10.0
libtpu: 0.0.40
codegen_flags: <defaults>
</compile_context>

<pallas_src>
import jax
import jax.numpy as jnp
from jax.experimental import pallas as pl
from jax.experimental.pallas import tpu as pltpu


def v_mlp_kernel(xt_ref, w1t_ref, b1_ref, w2_ref, b2_ref, o_ref):
    # xt_ref : (D, tm)   features on sublanes, batch on lanes
    # w1t_ref: (H, D)    first-layer weight, transposed, resident in VMEM
    # b1_ref : (H, 1)    first-layer bias as a column (broadcast over lanes)
    # w2_ref : (H, 1)    second-layer weight as a column
    # b2_ref : (1, 1)    second-layer bias, SMEM scalar
    # o_ref  : (1, tm)   lane-dense output tile (batch on lanes)

    # Hidden layer on the MXU: [H, D] @ [D, tm] -> (H, tm), f32 accumulate.
    h = jnp.dot(w1t_ref[...], xt_ref[...], preferred_element_type=jnp.float32)
    h = jnp.maximum(h + b1_ref[...], 0.0)          # bias + ReLU on the VPU

    # Output layer (N=1): VPU multiply + XLU sublane reduction instead of a
    # degenerate [H,1] MXU matmul.  Result is already lane-dense (1, tm).
    out = jnp.sum(h * w2_ref[...], axis=0, keepdims=True) + b2_ref[0, 0]
    o_ref[...] = out.astype(o_ref.dtype)


def v_forward(x, w1, b1, w2, b2, *, tm=128):
    """x: [B, D] f32; w1: [D, H]; b1: [H]; w2: [H, 1]; b2: [1] -> [B, 1]."""
    x = jnp.asarray(x, jnp.float32)
    B, D = x.shape
    H = w1.shape[1]

    # Layout plumbing (outside the kernel): batch -> lane axis, pad B to a
    # multiple of the tile so every block is (D, tm) / (1, tm).
    n_tiles = pl.cdiv(B, tm)
    Bp = n_tiles * tm
    xt = jnp.zeros((D, Bp), jnp.float32).at[:, :B].set(x.T)
    w1t = jnp.asarray(w1, jnp.float32).T.reshape(H, D)   # (H, D)
    b1c = jnp.asarray(b1, jnp.float32).reshape(H, 1)     # (H, 1)
    w2c = jnp.asarray(w2, jnp.float32).reshape(H, 1)     # (H, 1)
    b2s = jnp.asarray(b2, jnp.float32).reshape(1, 1)     # (1, 1) SMEM scalar

    out = pl.pallas_call(
        v_mlp_kernel,
        out_shape=jax.ShapeDtypeStruct((1, Bp), jnp.float32),
        grid_spec=pltpu.PrefetchScalarGridSpec(
            num_scalar_prefetch=0,
            grid=(n_tiles,),
            in_specs=[
                pl.BlockSpec((D, tm), lambda i: (0, i)),   # x^T tile (pipelined)
                pl.BlockSpec((H, D), lambda i: (0, 0)),    # w1^T (resident)
                pl.BlockSpec((H, 1), lambda i: (0, 0)),    # b1 column
                pl.BlockSpec((H, 1), lambda i: (0, 0)),    # w2 column
                pl.BlockSpec(memory_space=pltpu.MemorySpace.SMEM),  # b2 scalar
            ],
            out_specs=pl.BlockSpec((1, tm), lambda i: (0, i)),  # lane-dense
        ),
        compiler_params=pltpu.CompilerParams(
            dimension_semantics=("parallel",),  # batch tiles split across TCs
        ),
    )(xt, w1t, b1c, w2c, b2s)

    # Un-pad and return the PyTorch-shaped result [B, 1].
    return out[0, :B].reshape(B, 1)
    # TODO(synk): for very large B/D on v6e/v7x, cast xt/w1t to bfloat16 before
    # the first dot (keeping f32 accumulation) to halve HBM traffic on x.


def init_params(key, input_size, hidden=64):
    # Deterministic init mimicking torch.nn.Linear: U(-1/sqrt(fan_in), 1/sqrt(fan_in))
    k1, k2, k3, k4 = jax.random.split(key, 4)
    lim1 = 1.0 / jnp.sqrt(jnp.float32(input_size))
    lim2 = 1.0 / jnp.sqrt(jnp.float32(hidden))
    w1 = jax.random.uniform(k1, (input_size, hidden), jnp.float32, -lim1, lim1)
    b1 = jax.random.uniform(k2, (hidden,), jnp.float32, -lim1, lim1)
    w2 = jax.random.uniform(k3, (hidden, 1), jnp.float32, -lim2, lim2)
    b2 = jax.random.uniform(k4, (1,), jnp.float32, -lim2, lim2)
    return w1, b1, w2, b2


if __name__ == "__main__":
    input_size = 32
    batch = 200  # not a multiple of the 128-lane tile -> exercises padding + 2 grid steps

    key = jax.random.PRNGKey(0)
    kx, kp = jax.random.split(key)
    x = jax.random.normal(kx, (batch, input_size), jnp.float32)
    w1, b1, w2, b2 = init_params(kp, input_size)

    out = v_forward(x, w1, b1, w2, b2)
    jax.block_until_ready(out)

    # Reference check in plain JAX (same math as the PyTorch module).
    ref = jnp.maximum(x @ w1 + b1[None, :], 0.0) @ w2 + b2[None, :]
    assert out.shape == (batch, 1), out.shape
    assert jnp.allclose(out, ref, atol=1e-4, rtol=1e-4)

    print("KERNEL_OK")
</pallas_src>

<mosaic_0001>
module attributes {stable_mosaic.version = 11 : i64} {
  func.func @v_mlp_kernel(%arg0: i32, %arg1: memref<32x128xf32, #tpu.memory_space<vmem>>, %arg2: memref<64x32xf32, #tpu.memory_space<vmem>>, %arg3: memref<64x1xf32, #tpu.memory_space<vmem>>, %arg4: memref<64x1xf32, #tpu.memory_space<vmem>>, %arg5: memref<1x1xf32, #tpu.memory_space<smem>>, %arg6: memref<1x128xf32, #tpu.memory_space<vmem>>) attributes {dimension_semantics = [#tpu.dimension_semantics<parallel>], iteration_bounds = array<i64: 2>, scalar_prefetch = 0 : i64, scratch_operands = 0 : i64, tpu.core_type = #tpu.core_type<tc>, window_params = [{transform_indices = @transform_0, window_bounds = array<i64: 32, 128>}, {pipeline_mode = #tpu.pipeline_mode<synchronous>, transform_indices = @transform_1, window_bounds = array<i64: 64, 32>}, {pipeline_mode = #tpu.pipeline_mode<synchronous>, transform_indices = @transform_2, window_bounds = array<i64: 64, 1>}, {pipeline_mode = #tpu.pipeline_mode<synchronous>, transform_indices = @transform_3, window_bounds = array<i64: 64, 1>}, {transform_indices = @transform_4, window_bounds = array<i64: 1, 1>}, {transform_indices = @transform_5, window_bounds = array<i64: 1, 128>}]} {
    %c0 = arith.constant 0 : index
    %c0_0 = arith.constant 0 : index
    %0 = vector.load %arg2[%c0, %c0_0] : memref<64x32xf32, #tpu.memory_space<vmem>>, vector<64x32xf32>
    %c0_1 = arith.constant 0 : index
    %c0_2 = arith.constant 0 : index
    %1 = vector.load %arg1[%c0_1, %c0_2] : memref<32x128xf32, #tpu.memory_space<vmem>>, vector<32x128xf32>
    %cst = arith.constant dense<0.000000e+00> : vector<64x128xf32>
    %2 = tpu.matmul %0, %1, %cst {dimension_numbers = #tpu.dot_dimension_numbers<[1], [0], [0], [1], [0, 0, 1, 1], [], []>} : vector<64x32xf32>, vector<32x128xf32>, vector<64x128xf32> -> vector<64x128xf32>
    %c0_3 = arith.constant 0 : index
    %c0_4 = arith.constant 0 : index
    %3 = vector.load %arg3[%c0_3, %c0_4] : memref<64x1xf32, #tpu.memory_space<vmem>>, vector<64x1xf32>
    %4 = vector.broadcast %3 : vector<64x1xf32> to vector<64x128xf32>
    %5 = arith.addf %2, %4 : vector<64x128xf32>
    %cst_5 = arith.constant 0.000000e+00 : f32
    %6 = vector.broadcast %cst_5 : f32 to vector<64x128xf32>
    %7 = arith.maximumf %5, %6 : vector<64x128xf32>
    %c0_6 = arith.constant 0 : index
    %c0_7 = arith.constant 0 : index
    %8 = vector.load %arg4[%c0_6, %c0_7] : memref<64x1xf32, #tpu.memory_space<vmem>>, vector<64x1xf32>
    %9 = vector.broadcast %8 : vector<64x1xf32> to vector<64x128xf32>
    %10 = arith.mulf %7, %9 : vector<64x128xf32>
    %cst_8 = arith.constant dense<0.000000e+00> : vector<128xf32>
    %11 = vector.multi_reduction <add>, %10, %cst_8 [0] : vector<64x128xf32> to vector<128xf32>
    %12 = vector.shape_cast %11 : vector<128xf32> to vector<1x128xf32>
    %c0_9 = arith.constant 0 : index
    %c0_10 = arith.constant 0 : index
    %13 = memref.load %arg5[%c0_9, %c0_10] : memref<1x1xf32, #tpu.memory_space<smem>>
    %14 = vector.broadcast %13 : f32 to vector<1x128xf32>
    %15 = arith.addf %12, %14 : vector<1x128xf32>
    %c0_11 = arith.constant 0 : index
    %c0_12 = arith.constant 0 : index
    %16 = vector.load %arg6[%c0_11, %c0_12] : memref<1x128xf32, #tpu.memory_space<vmem>>, vector<1x128xf32>
    tpu.vector_store %arg6[%c0_11, %c0_12], %15 {strides = array<i32>} : memref<1x128xf32, #tpu.memory_space<vmem>>, vector<1x128xf32>,
    return
  }
  func.func @transform_0(%arg0: i32) -> (i32, i32) {
    %c0_i32 = arith.constant 0 : i32
    %c0_i32_0 = arith.constant 0 : i32
    return %c0_i32, %arg0 : i32, i32
  }
  func.func @transform_1(%arg0: i32) -> (i32, i32) {
    %c0_i32 = arith.constant 0 : i32
    %c0_i32_0 = arith.constant 0 : i32
    %c0_i32_1 = arith.constant 0 : i32
    return %c0_i32, %c0_i32_0 : i32, i32
  }
  func.func @transform_2(%arg0: i32) -> (i32, i32) {
    %c0_i32 = arith.constant 0 : i32
    %c0_i32_0 = arith.constant 0 : i32
    %c0_i32_1 = arith.constant 0 : i32
    return %c0_i32, %c0_i32_0 : i32, i32
  }
  func.func @transform_3(%arg0: i32) -> (i32, i32) {
    %c0_i32 = arith.constant 0 : i32
    %c0_i32_0 = arith.constant 0 : i32
    %c0_i32_1 = arith.constant 0 : i32
    return %c0_i32, %c0_i32_0 : i32, i32
  }
  func.func @transform_4(%arg0: i32) -> (i32, i32) {
    %c0_i32 = arith.constant 0 : i32
    %c0_i32_0 = arith.constant 0 : i32
    %c0_i32_1 = arith.constant 0 : i32
    return %c0_i32, %c0_i32_0 : i32, i32
  }
  func.func @transform_5(%arg0: i32) -> (i32, i32) {
    %c0_i32 = arith.constant 0 : i32
    %c0_i32_0 = arith.constant 0 : i32
    return %c0_i32, %arg0 : i32, i32
  }
}

</mosaic_0001>

<bundles_post_ra>
// kernel: tpu_custom_call.1
= control target key start
LH: loop header
LB: loop body
LE: loop exit
PB: predicated region body
PF: predicated region fallthrough
CT: control target
= control target key end

     0   :  { %s896_s0 = inlined_call_operand.vmem [shape: f32[32,256], index: 0, kind: input, shape index: {}]   ;;  %s897_s1 = inlined_call_operand.vmem [shape: f32[64,32], index: 1, kind: input, shape index: {}]   ;;  %s898_s2 = inlined_call_operand.vmem [shape: f32[64,1], index: 2, kind: input, shape index: {}]   ;;  %s899_s3 = inlined_call_operand.vmem [shape: f32[64,1], index: 3, kind: input, shape index: {}]   ;;  %s900_s4 = inlined_call_operand.<no memory space> [shape: f32[1,1], index: 4, kind: input, shape index: {}]   ;;  %s901_s5 = inlined_call_operand.hbm [shape: f32[1,256], index: 5, kind: output, shape index: {}]  }
   0x1   :  { %10 = sst [smem:[#allocation2]] %s900_s4 }
   0x2   :  { %11 = vsyncpa [#allocation5], 0 }
   0x3   :  { %13 = vsyncpa [#allocation5 + $0x1], 0  ;;  %s721_s20 = smov 0   ;;  %s723_s21 = smov 0  }
   0x4   :  { %s725_s22 = smov 0   ;;  %s727_s23 = smov 0  }
   0x5 LB: > { %s550_s4 = sadd.s32 4294967295, %s685_s23   ;;  %s551_s24 = sadd.s32 4294967294, %s685_s23   ;;  %s685_s23 = sphi %s727_s23, %s907_s23   ;;  %s681_s22 = sphi %s725_s22, %s906_s22   ;;  %s677_s21 = sphi %s723_s21, %s905_s21   ;;  %s673_s20 = sphi %s721_s20, %s904_s20  }
   0x6   : > { %s744_s25 = sadd.s32 1, %s685_s23   ;;  %s26_s26 = sadd.s32 1, %s681_s22 }
   0x7   : > { %s23_s27 = ssub.s32 %s685_s23, %s744_s25  ;;  %p33_p0 = scmp.ne.s32.totalorder %s681_s22, %s677_s21 }
   0x8   : > { %p24_p1 = scmp.eq.s32.totalorder %s23_s27, 0  ;;  %p34_p2 = scmp.eq.s32.totalorder %s685_s23, 0 }
   0x9   : > { %p147_p3 = scmp.eq.s32.totalorder %s550_s4, 1  ;;  %p152_p4 = scmp.ne.s32.totalorder %s677_s21, %s673_s20 }
   0xa   : > { %s757_s28 = scalar_select %p24_p1, %s681_s22, %s26_s26  }
   0xb   : > { %p35_p5 = por %p34_p2, %p33_p0  ;;  %p759_p6 = por %p147_p3, %p33_p0 }
   0xc   : > { %p153_p7 = scmp.eq.s32.totalorder %s551_s24, 1  ;;  %p553_p9 = scmp.ge.s32.totalorder %s685_s23, 2 }
   0xe   : > { %p763_p8 = por %p153_p7, %p152_p4  ;;  %181 = sbr.rel (%p553_p9) target bundleno = 27 (0x1b), region = 32 }
  0x13   : > { %184 = sbr.rel (!%p35_p5) target bundleno = 27 (0x1b), region = 36  ;;  %s186_s6 = sand.u32 (%p35_p5), 1, %s681_s22  }
  0x14   : > { %s555_s7 = sshll.u32 (%p35_p5), %s685_s23, 3  ;;  %s554_s8 = sshll.u32 (%p35_p5), %s186_s6, 5 }
  0x15   : > { %s190_s11 = scalar_lea.vmem (%p35_p5), %s896_s0, %s555_s7  ;;  %s188_s12 = scalar_lea.vmem (%p35_p5), [#allocation3], %s554_s8 }
  0x16   : > { %v225_v0 = vld [vmem:[%s190_s11] sm:$0xff] (%p35_p5)  ;;  %v227_v1 = vld [vmem:[%s190_s11 + $0x10] sm:$0xff] (%p35_p5) }
  0x17   : > { %v229_v2 = vld [vmem:[%s190_s11 + $0x20] sm:$0xff] (%p35_p5)  ;;  %226 = vst [vmem:[%s188_s12] sm:$0xff] (%p35_p5), %v225_v0  ;;  %v231_v3 = vld [vmem:[%s190_s11 + $0x30] sm:$0xff] (%p35_p5) }
  0x18   : > { %228 = vst [vmem:[%s188_s12 + $0x8] sm:$0xff] %v227_v1 }
  0x19   : > { %230 = vst [vmem:[%s188_s12 + $0x10] sm:$0xff] %v229_v2 }
  0x1a   : > { %232 = vst [vmem:[%s188_s12 + $0x18] sm:$0xff] %v231_v3 }
  0x1b PF: > { %p556_p10 = scmp.ge.s32.totalorder %s685_s23, 1  ;;  %p237_p11 = scmp.lt.s32.totalorder %s685_s23, 3 }
  0x1d   : > { %p238_p12 = pnand %p556_p10, %p237_p11 }
  0x1e   : > { %s784_s17 = sand.u32 (!%p238_p12), 1, %s677_s21   ;;  %s473_s15 = sld [smem:[#allocation2]] (!%p238_p12) }
  0x1f   : > { %241 = sbr.rel (%p238_p12) target bundleno = 220 (0xdc), region = 74  ;;  %s557_s24 = sshll.u32 (!%p238_p12), %s784_s17, 5 }
  0x20   : > { %s246_s26 = scalar_lea.vmem (!%p238_p12), [#allocation3], %s557_s24  ;;  %s486_s19 = scalar_lea.hbm (!%p238_p12), %s901_s5, %s550_s4 }
  0x21   : > { %s269_s24 = scalar_lea.vmem (!%p238_p12), [#allocation4], %s784_s17  ;;  %s490_s27 = sshll.u32 (!%p238_p12), %s486_s19, 4  ;;  %s491_s27 = int_to_ptr.hbm [resolvable:$true] %s490_s27 }
  0x22   : > { %s478_s6 = scalar_lea.sflag (!%p238_p12), [#allocation5], %s784_s17  ;;  %s637_s7 = sshra.s32 (!%p238_p12), %s491_s27, 4  ;;  %s638_s7 = int_to_ptr.hbm [resolvable:$true] %s637_s7 }
  0x23   : > { %s639_s8 = scalar_lea.hbm (!%p238_p12), %s638_s7, 1  ;;  %s643_s10 = scalar_lea.hbm (!%p238_p12), %s901_s5, 2 }
  0x24   : > { %v284_v4 = vld [vmem:[%s898_s2 + $0x10] sm:$0xff]  ;;  %v282_v5 = vld [vmem:[%s898_s2] sm:$0xff]  ;;  %v687_v6 = vmov 0   ;;  %v281_v8 = vld [vmem:[%s246_s26 + $0x18] sm:$0xff]  ;;  %vm330_vm0 = vcmask 261120   ;;  %p640_p13 = scmp.ne.s32.totalorder %s638_s7, %s639_s8  ;;  %p644_p2 = scmp.lt.s32.totalorder %s638_s7, %s901_s5 }
  0x25   : > { %621 = vset.pattern.permute.xlu1 %v687_v6  ;;  %620 = vset.pattern.permute.xlu0 %v687_v6  ;;  %v286_v7 = vld [vmem:[%s898_s2 + $0x20] sm:$0xff]  ;;  %v280_v9 = vld [vmem:[%s246_s26 + $0x10] sm:$0xff]  ;;  %v279_v10 = vld [vmem:[%s246_s26 + $0x8] sm:$0xff]  ;;  %p645_p3 = scmp.lt.s32.totalorder %s643_s10, %s639_s8 }
  0x26   : > { %302 = vperm.xlu1 %621, %v284_v4   ;;  %292 = vperm.xlu0 %620, %v282_v5   ;;  %v285_v11 = vld [vmem:[%s898_s2 + $0x18] sm:$0xff]  ;;  %v283_v12 = vld [vmem:[%s898_s2 + $0x8] sm:$0xff]  ;;  %v278_v13 = vld [vmem:[%s246_s26] sm:$0xff]  ;;  %s488_s26 = sshll.u32 %s269_s24, 4  ;;  %p641_p0 = pnand %p640_p13, %p759_p6  ;;  %s489_s26 = int_to_ptr.vmem [resolvable:$true] %s488_s26 }
  0x27   : > { %622 = vset.pattern.permute.xlu2 %v687_v6  ;;  %367 = vmatpush.msra.mxu0 %v281_v8  ;;  %v270_v14 = vld [vmem:[%s897_s1] sm:$0xff]  ;;  %v272_v15 = vld [vmem:[%s897_s1 + $0x10] sm:$0xff]  ;;  %v405_v20 = vld [vmem:[%s899_s3 + $0x8] sm:$0xff]  ;;  %p646_p4 = por %p645_p3, %p644_p2 }
  0x28   : > { %312 = vperm.xlu2 %622, %v286_v7   ;;  %568 = vmatpush.msra.mxu1 %v281_v8  ;;  %v274_v16 = vld [vmem:[%s897_s1 + $0x20] sm:$0xff]  ;;  %v276_v17 = vld [vmem:[%s897_s1 + $0x30] sm:$0xff]  ;;  %v271_v21 = vld [vmem:[%s897_s1 + $0x8] sm:$0xff]  ;;  %p642_p1 = pneg %p641_p0 }
  0x29   : > { %569 = vmatpush.msra.mxu2 %v281_v8  ;;  %570 = vmatpush.msra.mxu3 %v281_v8  ;;  %v404_v18 = vld [vmem:[%s899_s3] sm:$0xff]  ;;  %v406_v19 = vld [vmem:[%s899_s3 + $0x10] sm:$0xff]  ;;  %v273_v22 = vld [vmem:[%s897_s1 + $0x18] sm:$0xff] }
  0x2a   : > { %368 = vmatpush.msra.mxu0 %v280_v9  ;;  %571 = vmatpush.msra.mxu1 %v280_v9  ;;  %v275_v23 = vld [vmem:[%s897_s1 + $0x28] sm:$0xff]  ;;  %v277_v24 = vld [vmem:[%s897_s1 + $0x38] sm:$0xff]  ;;  %v288_v26 = vld [vmem:[%s898_s2 + $0x30] sm:$0xff]  ;;  %p647_p5 = pnand %p646_p4, %p642_p1 }
  0x2b   : > { %572 = vmatpush.msra.mxu2 %v280_v9  ;;  %573 = vmatpush.msra.mxu3 %v280_v9  ;;  %v287_v25 = vld [vmem:[%s898_s2 + $0x28] sm:$0xff]  ;;  %v407_v27 = vld [vmem:[%s899_s3 + $0x18] sm:$0xff]  ;;  %v408_v28 = vld [vmem:[%s899_s3 + $0x20] sm:$0xff] }
  0x2c   : > { %369 = vmatpush.msra.mxu0 %v279_v10  ;;  %574 = vmatpush.msra.mxu1 %v279_v10  ;;  %v409_v29 = vld [vmem:[%s899_s3 + $0x28] sm:$0xff]  ;;  %v289_v30 = vld [vmem:[%s898_s2 + $0x38] sm:$0xff]  ;;  %v410_v31 = vld [vmem:[%s899_s3 + $0x30] sm:$0xff] }
  0x2d   : > { %575 = vmatpush.msra.mxu2 %v279_v10  ;;  %576 = vmatpush.msra.mxu3 %v279_v10  ;;  %v411_v32 = vld [vmem:[%s899_s3 + $0x38] sm:$0xff] }
  0x2e   : > { %307 = vperm.xlu1 %621, %v285_v11   ;;  %297 = vperm.xlu0 %620, %v283_v12  }
  0x2f   : > { %370 = vmatpush.msra.mxu0 %v278_v13  ;;  %577 = vmatpush.msra.mxu1 %v278_v13 }
  0x30   : > { %578 = vmatpush.msra.mxu2 %v278_v13  ;;  %579 = vmatpush.msra.mxu3 %v278_v13 }
  0x31   : > { %558 = vmatmul.msk.f32.vlgmr.msra.gmra.mxu0 %vm330_vm0, %v270_v14  ;;  %560 = vmatmul.msk.f32.vlgmr.msra.gmra.mxu1 %vm330_vm0, %v272_v15 }
  0x32   : > { %562 = vmatmul.msk.f32.vlgmr.msra.gmra.mxu2 %vm330_vm0, %v274_v16  ;;  %564 = vmatmul.msk.f32.vlgmr.msra.gmra.mxu3 %vm330_vm0, %v276_v17 }
  0x33   : > { %414 = vperm.xlu2 %622, %v404_v18  }
  0x36   : > { %424 = vperm.xlu1 %621, %v406_v19   ;;  %419 = vperm.xlu0 %620, %v405_v20  }
  0x39   : > { %559 = vmatmul.msk.f32.gmra.mxu0 %vm330_vm0, %v271_v21  ;;  %561 = vmatmul.msk.f32.gmra.mxu1 %vm330_vm0, %v273_v22 }
  0x3a   : > { %563 = vmatmul.msk.f32.gmra.mxu2 %vm330_vm0, %v275_v23  ;;  %565 = vmatmul.msk.f32.gmra.mxu3 %vm330_vm0, %v277_v24 }
  0x3b   : > { %317 = vperm.xlu2 %622, %v287_v25  }
  0x3e   : > { %322 = vperm.xlu1 %621, %v288_v26   ;;  %429 = vperm.xlu0 %620, %v407_v27  }
  0x43   : > { %434 = vperm.xlu2 %622, %v408_v28  }
  0x46   : > { %439 = vperm.xlu1 %621, %v409_v29   ;;  %327 = vperm.xlu0 %620, %v289_v30   ;;  %v474_v29 = vstv %s473_s15 }
  0x4b   : > { %444 = vperm.xlu2 %622, %v410_v31  }
  0x4e   : > { %449 = vperm.xlu0 %620, %v411_v32  }
  0x82   : > { %v313_v35 = vpop.permute.xlu2 %312 }
  0x8d   : > { %v415_v38 = vpop.permute.xlu2 %414 }
  0x95   : > { %v318_v43 = vpop.permute.xlu2 %317 }
  0x98   : > { %v293_v33 = vpop.permute.xlu0 %292  ;;  %v303_v34 = vpop.permute.xlu1 %302 }
  0x9d   : > { %v435_v58 = vpop.permute.xlu2 %434 }
  0xa0   : > { %v298_v36 = vpop.permute.xlu0 %297  ;;  %v308_v37 = vpop.permute.xlu1 %307 }
  0xa5   : > { %v445_v16 = vpop.permute.xlu2 %444 }
  0xa8   : > { %v420_v39 = vpop.permute.xlu0 %419  ;;  %v425_v40 = vpop.permute.xlu1 %424 }
  0xae   : > { %v372_v41 = vpop.f32.mrf.mxu0  ;;  %v378_v42 = vpop.f32.mrf.mxu1 }
  0xaf   : > { %v373_v45 = vadd.f32 %v372_v41, %v293_v33  ;;  %v379_v46 = vadd.f32 %v378_v42, %v303_v34 }
  0xb0   : > { %v430_v44 = vpop.permute.xlu0 %429  ;;  %v323_v53 = vpop.permute.xlu1 %322 }
  0xb1   : > { %v396_v50 = vmax.f32 %v373_v45, 0.0  ;;  %v398_v55 = vmax.f32 %v379_v46, 0.0 }
  0xb3   : > { %v452_v60 = vmul.f32 %v415_v38, %v396_v50  ;;  %v454_v63 = vmul.f32 %v425_v40, %v398_v55 }
  0xb5   : > { %v384_v47 = vpop.f32.mrf.mxu2  ;;  %v390_v48 = vpop.f32.mrf.mxu3 }
  0xb6   : > { %v375_v49 = vpop.f32.mrf.mxu0  ;;  %v381_v52 = vpop.f32.mrf.mxu1  ;;  %v385_v56 = vadd.f32 %v384_v47, %v313_v35  ;;  %v391_v1 = vadd.f32 %v390_v48, %v323_v53 }
  0xb7   : > { %v376_v51 = vadd.f32 %v375_v49, %v298_v36  ;;  %v382_v54 = vadd.f32 %v381_v52, %v308_v37 }
  0xb8   : > { %v328_v59 = vpop.permute.xlu0 %327  ;;  %v400_v0 = vmax.f32 %v385_v56, 0.0  ;;  %v402_v10 = vmax.f32 %v391_v1, 0.0  ;;  %v440_v13 = vpop.permute.xlu1 %439 }
  0xb9   : > { %v397_v57 = vmax.f32 %v376_v51, 0.0  ;;  %v399_v62 = vmax.f32 %v382_v54, 0.0 }
  0xba   : > { %v456_v9 = vmul.f32 %v435_v58, %v400_v0  ;;  %v458_v18 = vmul.f32 %v445_v16, %v402_v10 }
  0xbb   : > { %v453_v61 = vmul.f32 %v420_v39, %v397_v57  ;;  %v455_v6 = vmul.f32 %v430_v44, %v399_v62 }
  0xbd   : > { %v460_v2 = vadd.f32 %v453_v61, %v452_v60  ;;  %v387_v3 = vpop.f32.mrf.mxu2  ;;  %v393_v5 = vpop.f32.mrf.mxu3 }
  0xbe   : > { %v388_v4 = vadd.f32 %v387_v3, %v318_v43  ;;  %v394_v12 = vadd.f32 %v393_v5, %v328_v59 }
  0xbf   : > { %v461_v7 = vadd.f32 %v460_v2, %v454_v63 }
  0xc0   : > { %v401_v8 = vmax.f32 %v388_v4, 0.0  ;;  %v450_v17 = vpop.permute.xlu0 %449  ;;  %v403_v20 = vmax.f32 %v394_v12, 0.0 }
  0xc1   : > { %v462_v11 = vadd.f32 %v461_v7, %v455_v6 }
  0xc2   : > { %v457_v14 = vmul.f32 %v440_v13, %v401_v8  ;;  %v459_v21 = vmul.f32 %v450_v17, %v403_v20 }
  0xc3   : > { %v463_v15 = vadd.f32 %v462_v11, %v456_v9 }
  0xc5   : > { %v464_v19 = vadd.f32 %v463_v15, %v457_v14 }
  0xc7   : > { %v465_v22 = vadd.f32 %v464_v19, %v458_v18 }
  0xc9   : > { %v466_v23 = vadd.f32 %v465_v22, %v459_v21 }
  0xcb   : > { %v467_v24 = vrot.slane %v466_v23, 4 }
  0xcd   : > { %v468_v25 = vadd.f32 %v467_v24, %v466_v23 }
  0xcf   : > { %v469_v26 = vrot.slane %v468_v25, 2 }
  0xd1   : > { %v470_v27 = vadd.f32 %v469_v26, %v468_v25 }
  0xd3   : > { %v471_v28 = vrot.slane %v470_v27, 1 }
  0xd5   : > { %v472_v30 = vadd.f32 %v471_v28, %v470_v27 }
  0xd7   : > { %v475_v31 = vadd.f32 %v474_v29, %v472_v30 }
  0xd9   : > { %476 = vst [vmem:[%s269_s24] sm:$0x1] %v475_v31 }
  0xda   : > { %650 = shalt.err (!%p647_p5)
}
  0xdb   : > { %580 = dma.vmem_to_hbm [thread:$0]  (%p759_p6), %s489_s26, 16, %s491_s27, %s478_s6  }
  0xdc PF: > { %s502_s17 = sand.u32 1, %s673_s20   ;;  %p583_p7 = pnand %p553_p9, %p763_p8 }
  0xdd   : > { %s503_s13 = scalar_lea.sflag [#allocation5], %s502_s17 }
  0xde   : > { %p584_p10 = pneg %p583_p7 }
  0xe0   : > { %668 = dma.done.wait (%p584_p10), %s503_s13, 16  }
  0xe1   : > { %670 = vsyncadd (%p584_p10), %s503_s13, 4294967280  ;;  %p16_p11 = scmp.ge.s32.totalorder %s744_s25, 4   ;;  %s904_s20 = smov %s677_s21 }
  0xe2   : > { %s905_s21 = smov %s681_s22  ;;  %s906_s22 = smov %s757_s28 }
  0xe3   : > { %s907_s23 = smov %s744_s25  ;;  %18 = sbr.rel (!%p16_p11) target bundleno = 5 (0x5), region = 118 }
  0xe8   :  { %508 = vsyncpa [#allocation5], 1 }
  0xe9   :  { %510 = vsyncpa [#allocation5 + $0x1], 1 }

</bundles_post_ra>
